<compile_context>
chip_gen: v6e
topology: v6e:2x2x1
jax: 0.10.0
libtpu: 0.0.40
codegen_flags: <defaults>
</compile_context>

<pallas_src>
import functools

import jax
import jax.numpy as jnp
from jax.experimental import pallas as pl
from jax.experimental.pallas import tpu as pltpu


def _mlp_kernel(x_ref, w1_ref, b1_ref, w2_ref, b2_ref, w3_ref, b3_ref, o_ref):
    # Fused 3-layer MLP, fully VMEM-resident per batch tile.
    # In-kernel cast of x to bf16 (saves a separate HBM pass in the wrapper).
    x = x_ref[...].astype(jnp.bfloat16)
    h1 = jnp.dot(x, w1_ref[...], preferred_element_type=jnp.float32) + b1_ref[...]
    h1 = jnp.maximum(h1, 0.0).astype(jnp.bfloat16)          # cast only just before next dot
    h2 = jnp.dot(h1, w2_ref[...], preferred_element_type=jnp.float32) + b2_ref[...]
    h2 = jnp.maximum(h2, 0.0).astype(jnp.bfloat16)
    out = jnp.dot(h2, w3_ref[...], preferred_element_type=jnp.float32) + b3_ref[...]
    o_ref[...] = out.astype(o_ref.dtype)


def _round_up(n, m):
    return ((n + m - 1) // m) * m


@functools.partial(jax.jit, static_argnames=("block_b", "out_dtype"))
def transaction_encoder_forward(x, params, block_b=4096, out_dtype=jnp.float32):
    """Pallas forward pass of TransactionEncoder.

    x: (B, input_dim) float32
    params: dict with w1 (in,256), b1 (1,256), w2 (256,128), b2 (1,128),
            w3 (128,emb), b3 (1,emb)   (all float32)
    out_dtype: jnp.float32 (PyTorch parity) or jnp.bfloat16 (halves output HBM writeback).
    """
    w1, b1 = params["w1"], params["b1"]
    w2, b2 = params["w2"], params["b2"]
    w3, b3 = params["w3"], params["b3"]

    B, in_dim = x.shape
    h1_dim = w1.shape[1]          # 256
    h2_dim = w2.shape[1]          # 128
    emb_dim = w3.shape[1]

    # bf16 MXU weight operands (tiny arrays); biases stay f32 (added to f32 accumulator).
    w1_bf = w1.astype(jnp.bfloat16)
    w2_bf = w2.astype(jnp.bfloat16)
    w3_bf = w3.astype(jnp.bfloat16)

    # Batch tile selection:
    #  * B > block_b: use the big tile (amortizes ~0.35us/step grid overhead, long DMA bursts).
    #  * 1024 <= B <= block_b: split into >= 2 tiles so v7x megacore can shard the batch axis.
    #  * small B: a single full-batch tile (block_shape == full dims keeps (8,128) rule happy).
    if B > block_b:
        bb = block_b
    elif B >= 1024:
        bb = _round_up(pl.cdiv(B, 2), 256)
    else:
        bb = B
    grid = (pl.cdiv(B, bb),)

    # Weights / biases are tiny -> whole-array blocks, resident in VMEM every step.
    def full(a):
        return pl.BlockSpec(a.shape, lambda i, _nd=a.ndim: (0,) * _nd)

    out_bytes = jnp.dtype(out_dtype).itemsize
    flops = 2 * B * (in_dim * h1_dim + h1_dim * h2_dim + h2_dim * emb_dim)
    bytes_accessed = (
        B * in_dim * 4                                                    # x (f32)
        + B * emb_dim * out_bytes                                         # out (unpadded)
        + (in_dim * h1_dim + h1_dim * h2_dim + h2_dim * emb_dim) * 2      # bf16 weights
        + (h1_dim + h2_dim + emb_dim) * 4                                 # f32 biases
    )

    out = pl.pallas_call(
        _mlp_kernel,
        out_shape=jax.ShapeDtypeStruct((B, emb_dim), out_dtype),
        grid_spec=pl.GridSpec(
            grid=grid,
            in_specs=[
                pl.BlockSpec((bb, in_dim), lambda i: (i, 0)),
                full(w1_bf), full(b1),
                full(w2_bf), full(b2),
                full(w3_bf), full(b3),
            ],
            out_specs=pl.BlockSpec((bb, emb_dim), lambda i: (i, 0)),
        ),
        compiler_params=pltpu.CompilerParams(
            dimension_semantics=("parallel",),      # shards batch tiles across TCs (v7x)
            vmem_limit_bytes=48 * 1024 * 1024,      # headroom for bb up to ~8192, fits v7x 64MiB
        ),
        cost_estimate=pl.CostEstimate(
            flops=flops, transcendentals=0, bytes_accessed=bytes_accessed
        ),
    )(x, w1_bf, b1, w2_bf, b2, w3_bf, b3)

    return out


def init_params(key, input_dim, embedding_dim):
    """Deterministic synthetic init (Kaiming-ish uniform like PyTorch Linear)."""
    dims = [(input_dim, 256), (256, 128), (128, embedding_dim)]
    params = {}
    for idx, (fan_in, fan_out) in enumerate(dims, start=1):
        key, kw, kb = jax.random.split(key, 3)
        bound = 1.0 / jnp.sqrt(jnp.float32(fan_in))
        params[f"w{idx}"] = jax.random.uniform(
            kw, (fan_in, fan_out), jnp.float32, -bound, bound
        )
        params[f"b{idx}"] = jax.random.uniform(
            kb, (1, fan_out), jnp.float32, -bound, bound
        )
    return params


def reference_forward_bf16(x, params):
    """Reference with the same bf16-operand / f32-accumulate recipe as the kernel."""
    bf = jnp.bfloat16
    h = jnp.dot(x.astype(bf), params["w1"].astype(bf),
                preferred_element_type=jnp.float32) + params["b1"]
    h = jnp.maximum(h, 0.0).astype(bf)
    h = jnp.dot(h, params["w2"].astype(bf),
                preferred_element_type=jnp.float32) + params["b2"]
    h = jnp.maximum(h, 0.0).astype(bf)
    return jnp.dot(h, params["w3"].astype(bf),
                   preferred_element_type=jnp.float32) + params["b3"]


def reference_forward_f32(x, params):
    h = jnp.maximum(x @ params["w1"] + params["b1"], 0.0)
    h = jnp.maximum(h @ params["w2"] + params["b2"], 0.0)
    return h @ params["w3"] + params["b3"]


if __name__ == "__main__":
    input_dim = 32
    embedding_dim = 64
    batch = 8

    key = jax.random.PRNGKey(0)
    key, kx = jax.random.split(key)
    x = jax.random.normal(kx, (batch, input_dim), jnp.float32)
    params = init_params(key, input_dim, embedding_dim)

    out = transaction_encoder_forward(x, params)
    out = jax.block_until_ready(out)
    assert out.shape == (batch, embedding_dim)
    assert out.dtype == jnp.float32

    # Tight check vs. a reference using the identical bf16-operand math.
    ref_bf = reference_forward_bf16(x, params)
    assert jnp.allclose(out, ref_bf, atol=1e-3, rtol=1e-3)

    # Loose check vs. the full-precision PyTorch-equivalent forward
    # (bf16 operands => ~1e-2 relative error expected).
    ref_f32 = reference_forward_f32(x, params)
    assert jnp.allclose(out, ref_f32, atol=5e-2, rtol=5e-2)

    print("KERNEL_OK")
</pallas_src>

<mosaic_0001>
module attributes {stable_mosaic.version = 11 : i64} {
  func.func @_mlp_kernel(%arg0: i32, %arg1: memref<8x32xf32, #tpu.memory_space<vmem>>, %arg2: memref<32x256xbf16, #tpu.memory_space<vmem>>, %arg3: memref<1x256xf32, #tpu.memory_space<vmem>>, %arg4: memref<256x128xbf16, #tpu.memory_space<vmem>>, %arg5: memref<1x128xf32, #tpu.memory_space<vmem>>, %arg6: memref<128x64xbf16, #tpu.memory_space<vmem>>, %arg7: memref<1x64xf32, #tpu.memory_space<vmem>>, %arg8: memref<8x64xf32, #tpu.memory_space<vmem>>) attributes {dimension_semantics = [#tpu.dimension_semantics<parallel>], iteration_bounds = array<i64: 1>, scalar_prefetch = 0 : i64, scratch_operands = 0 : i64, tpu.core_type = #tpu.core_type<tc>, window_params = [{transform_indices = @transform_0, window_bounds = array<i64: 8, 32>}, {pipeline_mode = #tpu.pipeline_mode<synchronous>, transform_indices = @transform_1, window_bounds = array<i64: 32, 256>}, {pipeline_mode = #tpu.pipeline_mode<synchronous>, transform_indices = @transform_2, window_bounds = array<i64: 1, 256>}, {pipeline_mode = #tpu.pipeline_mode<synchronous>, transform_indices = @transform_3, window_bounds = array<i64: 256, 128>}, {pipeline_mode = #tpu.pipeline_mode<synchronous>, transform_indices = @transform_4, window_bounds = array<i64: 1, 128>}, {pipeline_mode = #tpu.pipeline_mode<synchronous>, transform_indices = @transform_5, window_bounds = array<i64: 128, 64>}, {pipeline_mode = #tpu.pipeline_mode<synchronous>, transform_indices = @transform_6, window_bounds = array<i64: 1, 64>}, {transform_indices = @transform_7, window_bounds = array<i64: 8, 64>}]} {
    %c0 = arith.constant 0 : index
    %c0_0 = arith.constant 0 : index
    %0 = vector.load %arg1[%c0, %c0_0] : memref<8x32xf32, #tpu.memory_space<vmem>>, vector<8x32xf32>
    %1 = arith.truncf %0 : vector<8x32xf32> to vector<8x32xbf16>
    %c0_1 = arith.constant 0 : index
    %c0_2 = arith.constant 0 : index
    %2 = vector.load %arg2[%c0_1, %c0_2] : memref<32x256xbf16, #tpu.memory_space<vmem>>, vector<32x256xbf16>
    %cst = arith.constant dense<0.000000e+00> : vector<8x256xf32>
    %3 = tpu.matmul %1, %2, %cst {dimension_numbers = #tpu.dot_dimension_numbers<[1], [0], [0], [1], [0, 0, 1, 1], [], []>} : vector<8x32xbf16>, vector<32x256xbf16>, vector<8x256xf32> -> vector<8x256xf32>
    %c0_3 = arith.constant 0 : index
    %c0_4 = arith.constant 0 : index
    %4 = vector.load %arg3[%c0_3, %c0_4] : memref<1x256xf32, #tpu.memory_space<vmem>>, vector<1x256xf32>
    %5 = vector.broadcast %4 : vector<1x256xf32> to vector<8x256xf32>
    %6 = arith.addf %3, %5 : vector<8x256xf32>
    %cst_5 = arith.constant 0.000000e+00 : f32
    %7 = vector.broadcast %cst_5 : f32 to vector<8x256xf32>
    %8 = arith.maximumf %6, %7 : vector<8x256xf32>
    %9 = arith.truncf %8 : vector<8x256xf32> to vector<8x256xbf16>
    %c0_6 = arith.constant 0 : index
    %c0_7 = arith.constant 0 : index
    %10 = vector.load %arg4[%c0_6, %c0_7] : memref<256x128xbf16, #tpu.memory_space<vmem>>, vector<256x128xbf16>
    %cst_8 = arith.constant dense<0.000000e+00> : vector<8x128xf32>
    %11 = tpu.matmul %9, %10, %cst_8 {dimension_numbers = #tpu.dot_dimension_numbers<[1], [0], [0], [1], [0, 0, 1, 1], [], []>} : vector<8x256xbf16>, vector<256x128xbf16>, vector<8x128xf32> -> vector<8x128xf32>
    %c0_9 = arith.constant 0 : index
    %c0_10 = arith.constant 0 : index
    %12 = vector.load %arg5[%c0_9, %c0_10] : memref<1x128xf32, #tpu.memory_space<vmem>>, vector<1x128xf32>
    %13 = vector.broadcast %12 : vector<1x128xf32> to vector<8x128xf32>
    %14 = arith.addf %11, %13 : vector<8x128xf32>
    %cst_11 = arith.constant 0.000000e+00 : f32
    %15 = vector.broadcast %cst_11 : f32 to vector<8x128xf32>
    %16 = arith.maximumf %14, %15 : vector<8x128xf32>
    %17 = arith.truncf %16 : vector<8x128xf32> to vector<8x128xbf16>
    %c0_12 = arith.constant 0 : index
    %c0_13 = arith.constant 0 : index
    %18 = vector.load %arg6[%c0_12, %c0_13] : memref<128x64xbf16, #tpu.memory_space<vmem>>, vector<128x64xbf16>
    %cst_14 = arith.constant dense<0.000000e+00> : vector<8x64xf32>
    %19 = tpu.matmul %17, %18, %cst_14 {dimension_numbers = #tpu.dot_dimension_numbers<[1], [0], [0], [1], [0, 0, 1, 1], [], []>} : vector<8x128xbf16>, vector<128x64xbf16>, vector<8x64xf32> -> vector<8x64xf32>
    %c0_15 = arith.constant 0 : index
    %c0_16 = arith.constant 0 : index
    %20 = vector.load %arg7[%c0_15, %c0_16] : memref<1x64xf32, #tpu.memory_space<vmem>>, vector<1x64xf32>
    %21 = vector.broadcast %20 : vector<1x64xf32> to vector<8x64xf32>
    %22 = arith.addf %19, %21 : vector<8x64xf32>
    %c0_17 = arith.constant 0 : index
    %c0_18 = arith.constant 0 : index
    %23 = vector.load %arg8[%c0_17, %c0_18] : memref<8x64xf32, #tpu.memory_space<vmem>>, vector<8x64xf32>
    tpu.vector_store %arg8[%c0_17, %c0_18], %22 {strides = array<i32>} : memref<8x64xf32, #tpu.memory_space<vmem>>, vector<8x64xf32>,
    return
  }
  func.func @transform_0(%arg0: i32) -> (i32, i32) {
    %c0_i32 = arith.constant 0 : i32
    %c0_i32_0 = arith.constant 0 : i32
    return %arg0, %c0_i32 : i32, i32
  }
  func.func @transform_1(%arg0: i32) -> (i32, i32) {
    %c0_i32 = arith.constant 0 : i32
    %c0_i32_0 = arith.constant 0 : i32
    %c0_i32_1 = arith.constant 0 : i32
    return %c0_i32, %c0_i32_0 : i32, i32
  }
  func.func @transform_2(%arg0: i32) -> (i32, i32) {
    %c0_i32 = arith.constant 0 : i32
    %c0_i32_0 = arith.constant 0 : i32
    %c0_i32_1 = arith.constant 0 : i32
    return %c0_i32, %c0_i32_0 : i32, i32
  }
  func.func @transform_3(%arg0: i32) -> (i32, i32) {
    %c0_i32 = arith.constant 0 : i32
    %c0_i32_0 = arith.constant 0 : i32
    %c0_i32_1 = arith.constant 0 : i32
    return %c0_i32, %c0_i32_0 : i32, i32
  }
  func.func @transform_4(%arg0: i32) -> (i32, i32) {
    %c0_i32 = arith.constant 0 : i32
    %c0_i32_0 = arith.constant 0 : i32
    %c0_i32_1 = arith.constant 0 : i32
    return %c0_i32, %c0_i32_0 : i32, i32
  }
  func.func @transform_5(%arg0: i32) -> (i32, i32) {
    %c0_i32 = arith.constant 0 : i32
    %c0_i32_0 = arith.constant 0 : i32
    %c0_i32_1 = arith.constant 0 : i32
    return %c0_i32, %c0_i32_0 : i32, i32
  }
  func.func @transform_6(%arg0: i32) -> (i32, i32) {
    %c0_i32 = arith.constant 0 : i32
    %c0_i32_0 = arith.constant 0 : i32
    %c0_i32_1 = arith.constant 0 : i32
    return %c0_i32, %c0_i32_0 : i32, i32
  }
  func.func @transform_7(%arg0: i32) -> (i32, i32) {
    %c0_i32 = arith.constant 0 : i32
    %c0_i32_0 = arith.constant 0 : i32
    return %arg0, %c0_i32 : i32, i32
  }
}

</mosaic_0001>

<bundles_post_ra>
// kernel: transaction_encoder_forward.1
= control target key start
LH: loop header
LB: loop body
LE: loop exit
PB: predicated region body
PF: predicated region fallthrough
CT: control target
= control target key end

     0   :  { %v557_v2 = vmov 0   ;;  %vm66_vm0 = vcmask 261120   ;;  %s700_s0 = inlined_call_operand.vmem [shape: f32[8,32], index: 0, kind: input, shape index: {}]   ;;  %s701_s1 = inlined_call_operand.vmem [shape: bf16[32,256], index: 1, kind: input, shape index: {}]   ;;  %s702_s2 = inlined_call_operand.vmem [shape: f32[1,256], index: 2, kind: input, shape index: {}]   ;;  %s703_s3 = inlined_call_operand.vmem [shape: bf16[256,128], index: 3, kind: input, shape index: {}]   ;;  %s704_s4 = inlined_call_operand.vmem [shape: f32[1,128], index: 4, kind: input, shape index: {}]   ;;  %s705_s5 = inlined_call_operand.vmem [shape: bf16[128,64], index: 5, kind: input, shape index: {}]   ;;  %s706_s6 = inlined_call_operand.vmem [shape: f32[1,64], index: 6, kind: input, shape index: {}]   ;;  %s707_s7 = inlined_call_operand.hbm [shape: f32[8,64], index: 7, kind: output, shape index: {}]  }
   0x1   :  { %v505_v0 = vld [vmem:[%s701_s1 + $0x14] ss:$8 sps:$4 sm:$0xff]   ;;  %v507_v1 = vld [vmem:[%s701_s1 + $0x10] ss:$8 sps:$4 sm:$0xff]   ;;  %102 = vmatprep.mubr.bf16.mxu0 %v557_v2  ;;  %v508_v3 = vld [vmem:[%s701_s1 + $0x4] ss:$8 sps:$4 sm:$0xff]  }
   0x2   :  { %82 = vmatprep.subr.bf16.mxu0 %v505_v0  ;;  %v510_v4 = vld [vmem:[%s701_s1] ss:$8 sps:$4 sm:$0xff]   ;;  %v511_v6 = vld [vmem:[%s703_s3 + $0x78] sm:$0xff]   ;;  %v513_v8 = vld [vmem:[%s703_s3 + $0x70] sm:$0xff]  }
   0x3   :  { %v28_v5 = vld [vmem:[%s700_s0] sm:$0xff]  ;;  %83 = vmatpush1.bf16.msra.mxu0 %v507_v1  ;;  %v512_v7 = vld [vmem:[%s703_s3 + $0x38] sm:$0xff]   ;;  %450 = vmatprep.subr.bf16.mxu1 %v511_v6  ;;  %v514_v10 = vld [vmem:[%s703_s3 + $0x30] sm:$0xff]  }
   0x4   :  { %84 = vmatprep.subr.bf16.mxu0 %v508_v3  ;;  %v29_v9 = vpack.c.bf16 %v28_v5, %v28_v5  ;;  %451 = vmatpush3.bf16.msra.mxu1 %v512_v7  ;;  %v515_v11 = vld [vmem:[%s703_s3 + $0x68] sm:$0xff]   ;;  %v517_v13 = vld [vmem:[%s703_s3 + $0x60] sm:$0xff]   ;;  %v519_v15 = vld [vmem:[%s703_s3 + $0x58] sm:$0xff]  }
   0x5   :  { %452 = vmatprep.subr.bf16.mxu1 %v513_v8  ;;  %v516_v12 = vld [vmem:[%s703_s3 + $0x28] sm:$0xff]   ;;  %v518_v14 = vld [vmem:[%s703_s3 + $0x20] sm:$0xff]   ;;  %v520_v16 = vld [vmem:[%s703_s3 + $0x18] sm:$0xff]  }
   0x6   :  { %v521_v17 = vld [vmem:[%s703_s3 + $0x50] sm:$0xff]  }
   0x7   :  { %85 = vmatpush1.bf16.msra.mxu0 %v510_v4  ;;  %v522_v18 = vld [vmem:[%s703_s3 + $0x10] sm:$0xff]  }
   0x8   :  { %453 = vmatpush3.bf16.msra.mxu1 %v514_v10 }
   0x9   :  { %454 = vmatprep.subr.bf16.mxu1 %v515_v11 }
   0xa   :  { %423 = vmatmul.mubr.msk.bf16.vlgmr.msra.gmra.mxu0 %vm66_vm0, %v29_v9 }
   0xc   :  { %455 = vmatpush3.bf16.msra.mxu1 %v516_v12 }
   0xd   :  { %456 = vmatprep.subr.bf16.mxu1 %v517_v13 }
  0x10   :  { %457 = vmatpush3.bf16.msra.mxu1 %v518_v14 }
  0x11   :  { %458 = vmatprep.subr.bf16.mxu1 %v519_v15 }
  0x14   :  { %459 = vmatpush3.bf16.msra.mxu1 %v520_v16 }
  0x15   :  { %460 = vmatprep.subr.bf16.mxu1 %v521_v17 }
  0x16   :  { %12 = vsyncpa [#allocation3], 0  ;;  %v523_v19 = vld [vmem:[%s703_s3 + $0x48] sm:$0xff]   ;;  %v525_v21 = vld [vmem:[%s703_s3 + $0x40] sm:$0xff]   ;;  %v558_v24 = vmov 0.0   ;;  %v36_v29 = vlaneseq  ;;  %vm559_vm1 = vmmov 0  }
  0x17   :  { %v524_v20 = vld [vmem:[%s703_s3 + $0x8] sm:$0xff]   ;;  %v526_v22 = vld [vmem:[%s703_s3] sm:$0xff]   ;;  %v527_v23 = vld [vmem:[%s705_s5 + $0x38] sm:$0xff]   ;;  %481 = vmatprep.subr.bf16.mxu0 %v558_v24  ;;  %497 = vmatprep.mubr.msk.bf16.mxu0 %vm559_vm1, %v558_v24  ;;  %vm403_vm2 = vcmask 523264  }
  0x18   :  { %461 = vmatpush3.bf16.msra.mxu1 %v522_v18  ;;  %482 = vmatpush3.bf16.msra.mxu0 %v527_v23  ;;  %v528_v25 = vld [vmem:[%s705_s5 + $0x30] sm:$0xff]   ;;  %v529_v26 = vld [vmem:[%s705_s5 + $0x28] sm:$0xff]   ;;  %v530_v27 = vld [vmem:[%s705_s5 + $0x20] sm:$0xff]   ;;  %v37_v30 = vshrl.u32 %v36_v29, 7 }
  0x19   :  { %462 = vmatprep.subr.bf16.mxu1 %v523_v19  ;;  %483 = vmatprep.subr.bf16.mxu0 %v558_v24  ;;  %v531_v28 = vld [vmem:[%s705_s5 + $0x18] sm:$0xff]   ;;  %v34_v32 = vld [vmem:[%s702_s2] sm:$0x3]  ;;  %v532_v46 = vld [vmem:[%s705_s5 + $0x10] sm:$0xff]  }
  0x1a   :  { %v38_v31 = vsub.s32 0, %v37_v30  ;;  %v42_v33 = vsub.s32 1, %v37_v30  ;;  %v533_v47 = vld [vmem:[%s705_s5 + $0x8] sm:$0xff]   ;;  %v534_v48 = vld [vmem:[%s705_s5] sm:$0xff]   ;;  %s560_s5 = smov [#allocation2]  }
  0x1b   :  { %v424_v50 = vld [vmem:[%s704_s4] ss:$0 sm:$0xff]  ;;  %s411_s13 = sshll.u32 %s560_s5, 4  ;;  %s412_s13 = int_to_ptr.vmem [resolvable:$true] %s411_s13 }
  0x1c   :  { %463 = vmatpush3.bf16.msra.mxu1 %v524_v20  ;;  %484 = vmatpush3.bf16.msra.mxu0 %v528_v25  ;;  %v39_v34 = vrot.slane %v34_v32, %v38_v31  ;;  %v43_v35 = vrot.slane %v34_v32, %v42_v33  ;;  %v441_v58 = vld [vmem:[%s706_s6] ss:$0 sm:$0xff]  ;;  %s535_s4 = scalar_lea.vmem %s412_s13, 128  ;;  %p540_p1 = scmp.lt.s32.totalorder %s412_s13, %s412_s13 }
  0x1d   :  { %464 = vmatprep.subr.bf16.mxu1 %v525_v21  ;;  %485 = vmatprep.subr.bf16.mxu0 %v558_v24  ;;  %p536_p0 = scmp.ne.s32.totalorder %s412_s13, %s535_s4  ;;  %p541_p2 = scmp.lt.s32.totalorder %s535_s4, %s535_s4 }
  0x1f   :  { %p542_p3 = por %p541_p2, %p540_p1 }
  0x20   :  { %465 = vmatpush3.bf16.msra.mxu1 %v526_v22  ;;  %486 = vmatpush3.bf16.msra.mxu0 %v529_v26 }
  0x21   :  { %487 = vmatprep.subr.bf16.mxu0 %v558_v24  ;;  %p543_p4 = pnand %p542_p3, %p536_p0 }
  0x24   :  { %488 = vmatpush3.bf16.msra.mxu0 %v530_v27 }
  0x25   :  { %489 = vmatprep.subr.bf16.mxu0 %v558_v24 }
  0x28   :  { %490 = vmatpush3.bf16.msra.mxu0 %v531_v28 }
  0x29   :  { %491 = vmatprep.subr.bf16.mxu0 %v558_v24 }
  0x2c   :  { %492 = vmatpush3.bf16.msra.mxu0 %v532_v46 }
  0x2d   :  { %493 = vmatprep.subr.bf16.mxu0 %v558_v24 }
  0x30   :  { %494 = vmatpush3.bf16.msra.mxu0 %v533_v47 }
  0x31   :  { %495 = vmatprep.subr.bf16.mxu0 %v558_v24 }
  0x34   :  { %496 = vmatpush3.bf16.msra.mxu0 %v534_v48 }
  0xca   :  { %v104_v36 = vpop.f32.mrf.mxu0 }
  0xcb   :  { %v105_v37 = vadd.f32 %v104_v36, %v39_v34 }
  0xcc   :  { %v106_v38 = vpop.f32.mrf.mxu0 }
  0xcd   :  { %v107_v39 = vadd.f32 %v106_v38, %v43_v35  ;;  %v111_v40 = vmax.f32 %v105_v37, 0.0 }
  0xce   :  { %v108_v41 = vpop.f32.mrf.mxu0 }
  0xcf   :  { %v112_v42 = vmax.f32 %v107_v39, 0.0  ;;  %v113_v45 = vpack.c.bf16 %v111_v40, %v111_v40 }
  0xd0   :  { %v109_v43 = vpop.f32.mrf.mxu0 }
  0xd1   :  { %v114_v44 = vpack.c.bf16 %v112_v42, %v112_v42 }
  0xd3   :  { %282 = vmatprep.mubr.bf16.mxu1 %v114_v44 }
  0xd4   :  { %283 = vmatmul.mubr.bf16.vlgmr.msra.gmra.mxu1 %v113_v45 }
 0x194   :  { %v466_v49 = vpop.f32.mrf.mxu1 }
 0x196   :  { %v467_v51 = vpop.f32.mrf.mxu1 }
 0x197   :  { %v468_v52 = vadd.f32 %v467_v51, %v466_v49 }
 0x198   :  { %v469_v53 = vpop.f32.mrf.mxu1 }
 0x199   :  { %v285_v54 = vadd.f32 %v468_v52, %v424_v50 }
 0x19a   :  { %v470_v55 = vpop.f32.mrf.mxu1 }
 0x19b   :  { %v290_v56 = vmax.f32 %v285_v54, 0.0 }
 0x19d   :  { %v291_v57 = vpack.c.bf16 %v290_v56, %v290_v56 }
 0x19f   :  { %498 = vmatmul.mubr.bf16.vlgmr.msra.gmra.mxu0 %v291_v57 }
 0x25f   :  { %v397_v59 = vpop.f32.mrf.mxu0 }
 0x260   :  { %v398_v60 = vadd.f32 %v441_v58, %v397_v59 }
 0x261   :  { %v499_v61 = vpop.f32.mrf.mxu0 }
 0x262   :  { %404 = vst.msk [vmem:[#allocation2] sm:$0xff] %vm403_vm2, %v398_v60 }
 0x263   :  { %v400_v62 = vpop.f32.mrf.mxu0 }
 0x264   :  { %546 = shalt.err (!%p543_p4)
}
 0x265   :  { %414 = dma.vmem_to_hbm [thread:$0]  %s412_s13, 128, %s707_s7, [#allocation3]   ;;  %v500_v63 = vpop.f32.mrf.mxu0 }
 0x266   :  { %555 = dma.done.wait [#allocation3], 128  }
 0x267   :  { %556 = vsyncadd [#allocation3], 4294967168 }
 0x268   :  { %418 = vsyncpa [#allocation3], 1 }

</bundles_post_ra>
